<compile_context>
chip_gen: v5e
topology: v5e:2x2
jax: 0.10.0
libtpu: 0.0.40
codegen_flags: <defaults>
</compile_context>

<pallas_src>
import functools

import jax
import jax.numpy as jnp
from jax.experimental import pallas as pl
from jax.experimental.pallas import tpu as pltpu


def _delta_loss_kernel(pred_ref, tgt_ref, out_ref, *, bin_size, num_bins):
    pred = pred_ref[...].astype(jnp.float32)        # (B, 3K)  [azi | ele | rol]
    tgt = tgt_ref[...].astype(jnp.float32)          # (B, 3)
    B, K3 = pred.shape
    K = num_bins

    # One divide for both mod and floordiv:
    #   t = target / bin ; label = floor(t) ; target_delta = t - label
    t = tgt / jnp.float32(bin_size)                 # (B, 3)
    label_f = jnp.floor(t)                          # (B, 3)
    target_delta = t - label_f                      # (B, 3)
    label = jnp.clip(label_f.astype(jnp.int32), 0, K - 1)  # (B, 3)

    # Per-lane head selection on the packed (B, 3K) tile.
    col = jax.lax.broadcasted_iota(jnp.int32, (B, K3), 1)   # lane index
    in_h1 = col >= K                                        # head >= 1
    in_h2 = col >= 2 * K                                    # head >= 2

    label_b = jnp.where(
        in_h2, label[:, 2:3], jnp.where(in_h1, label[:, 1:2], label[:, 0:1]))
    td_b = jnp.where(
        in_h2, target_delta[:, 2:3],
        jnp.where(in_h1, target_delta[:, 1:2], target_delta[:, 0:1]))
    offset = (in_h1.astype(jnp.int32) + in_h2.astype(jnp.int32)) * K
    onehot = col == (label_b + offset)              # (B, 3K) bool, one hit/head

    # Fused SmoothL1(5*pred, 5*target_delta), beta=1.0, masked + single reduce.
    diff = 5.0 * pred - 5.0 * td_b
    adiff = jnp.abs(diff)
    elem = jnp.where(adiff < 1.0, 0.5 * adiff * adiff, adiff - 0.5)
    masked = jnp.where(onehot, elem, 0.0)

    # Mean over the B*3 gathered elements; scalar goes out through SMEM.
    out_ref[0, 0] = jnp.sum(masked) * jnp.float32(1.0 / (B * 3))


def delta_loss_pallas(pred_azi, pred_ele, pred_rol, target, bin_size):
    B, K = pred_azi.shape
    # Pack the three heads lane-wise -> single (B, 3K) input DMA.
    pred = jnp.concatenate([pred_azi, pred_ele, pred_rol], axis=1)
    kernel = functools.partial(
        _delta_loss_kernel, bin_size=float(bin_size), num_bins=K)
    out = pl.pallas_call(
        kernel,
        out_shape=jax.ShapeDtypeStruct((1, 1), jnp.float32),
        in_specs=[
            pl.BlockSpec(memory_space=pltpu.MemorySpace.VMEM),
            pl.BlockSpec(memory_space=pltpu.MemorySpace.VMEM),
        ],
        out_specs=pl.BlockSpec(memory_space=pltpu.MemorySpace.SMEM),
    )(pred, target)
    return out[0, 0]


def delta_loss_ref(pred_azi, pred_ele, pred_rol, target, bin_size):
    # Pure-JAX reference mirroring the PyTorch code.
    target_delta = (target % bin_size) / bin_size
    label = jnp.floor_divide(target, bin_size).astype(jnp.int32)
    b = jnp.arange(pred_azi.shape[0])
    pred_delta = jnp.stack(
        [pred_azi[b, label[:, 0]],
         pred_ele[b, label[:, 1]],
         pred_rol[b, label[:, 2]]], axis=1)
    diff = jnp.abs(5.0 * pred_delta - 5.0 * target_delta)
    elem = jnp.where(diff < 1.0, 0.5 * diff * diff, diff - 0.5)
    return jnp.mean(elem)


if __name__ == "__main__":
    # DeltaLoss(bin=15.0): angles in [0, 360) -> 24 bins per angle head.
    BIN = 15.0
    B, K = 8, 24

    key = jax.random.PRNGKey(0)
    k1, k2, k3, k4 = jax.random.split(key, 4)
    pred_azi = jax.random.normal(k1, (B, K), dtype=jnp.float32)
    pred_ele = jax.random.normal(k2, (B, K), dtype=jnp.float32)
    pred_rol = jax.random.normal(k3, (B, K), dtype=jnp.float32)
    target = jax.random.uniform(k4, (B, 3), dtype=jnp.float32,
                                minval=0.0, maxval=360.0)

    loss = delta_loss_pallas(pred_azi, pred_ele, pred_rol, target, BIN)
    loss = jax.block_until_ready(loss)

    ref = delta_loss_ref(pred_azi, pred_ele, pred_rol, target, BIN)
    assert jnp.allclose(loss, ref, atol=1e-5, rtol=1e-5), (loss, ref)

    print("KERNEL_OK")
</pallas_src>

<mosaic_0001>
module attributes {stable_mosaic.version = 11 : i64} {
  func.func @_delta_loss_kernel(%arg0: memref<8x72xf32, #tpu.memory_space<vmem>>, %arg1: memref<8x3xf32, #tpu.memory_space<vmem>>, %arg2: memref<1x1xf32, #tpu.memory_space<smem>>) attributes {dimension_semantics = [], scalar_prefetch = 0 : i64, scratch_operands = 0 : i64, tpu.core_type = #tpu.core_type<tc>} {
    %c0 = arith.constant 0 : index
    %c0_0 = arith.constant 0 : index
    %0 = vector.load %arg0[%c0, %c0_0] : memref<8x72xf32, #tpu.memory_space<vmem>>, vector<8x72xf32>
    %c0_1 = arith.constant 0 : index
    %c0_2 = arith.constant 0 : index
    %1 = vector.load %arg1[%c0_1, %c0_2] : memref<8x3xf32, #tpu.memory_space<vmem>>, vector<8x3xf32>
    %cst = arith.constant 1.500000e+01 : f32
    %2 = vector.broadcast %cst : f32 to vector<8x3xf32>
    %3 = arith.divf %1, %2 : vector<8x3xf32>
    %4 = math.floor %3 : vector<8x3xf32>
    %5 = arith.subf %3, %4 : vector<8x3xf32>
    %6 = arith.fptosi %4 : vector<8x3xf32> to vector<8x3xi32>
    %c0_i32 = arith.constant 0 : i32
    %c23_i32 = arith.constant 23 : i32
    %7 = vector.broadcast %c0_i32 : i32 to vector<8x3xi32>
    %8 = arith.maxsi %7, %6 : vector<8x3xi32>
    %9 = vector.broadcast %c23_i32 : i32 to vector<8x3xi32>
    %10 = arith.minsi %9, %8 : vector<8x3xi32>
    %11 = tpu.iota {dimensions = array<i32: 1>} : vector<8x72xi32>
    %c24_i32 = arith.constant 24 : i32
    %12 = vector.broadcast %c24_i32 : i32 to vector<8x72xi32>
    %13 = arith.cmpi sge, %11, %12 : vector<8x72xi32>
    %c48_i32 = arith.constant 48 : i32
    %14 = vector.broadcast %c48_i32 : i32 to vector<8x72xi32>
    %15 = arith.cmpi sge, %11, %14 : vector<8x72xi32>
    %16 = vector.extract_strided_slice %10 {offsets = [0, 2], sizes = [8, 1], strides = [1, 1]} : vector<8x3xi32> to vector<8x1xi32>
    %17 = vector.extract_strided_slice %10 {offsets = [0, 1], sizes = [8, 1], strides = [1, 1]} : vector<8x3xi32> to vector<8x1xi32>
    %18 = vector.extract_strided_slice %10 {offsets = [0, 0], sizes = [8, 1], strides = [1, 1]} : vector<8x3xi32> to vector<8x1xi32>
    %19 = vector.shape_cast %17 : vector<8x1xi32> to vector<8x1xi32>
    %20 = vector.broadcast %19 : vector<8x1xi32> to vector<8x72xi32>
    %21 = vector.shape_cast %18 : vector<8x1xi32> to vector<8x1xi32>
    %22 = vector.broadcast %21 : vector<8x1xi32> to vector<8x72xi32>
    %23 = arith.select %13, %20, %22 : vector<8x72xi1>, vector<8x72xi32>
    %24 = vector.shape_cast %16 : vector<8x1xi32> to vector<8x1xi32>
    %25 = vector.broadcast %24 : vector<8x1xi32> to vector<8x72xi32>
    %26 = arith.select %15, %25, %23 : vector<8x72xi1>, vector<8x72xi32>
    %27 = vector.extract_strided_slice %5 {offsets = [0, 2], sizes = [8, 1], strides = [1, 1]} : vector<8x3xf32> to vector<8x1xf32>
    %28 = vector.extract_strided_slice %5 {offsets = [0, 1], sizes = [8, 1], strides = [1, 1]} : vector<8x3xf32> to vector<8x1xf32>
    %29 = vector.extract_strided_slice %5 {offsets = [0, 0], sizes = [8, 1], strides = [1, 1]} : vector<8x3xf32> to vector<8x1xf32>
    %30 = vector.shape_cast %28 : vector<8x1xf32> to vector<8x1xf32>
    %31 = vector.broadcast %30 : vector<8x1xf32> to vector<8x72xf32>
    %32 = vector.shape_cast %29 : vector<8x1xf32> to vector<8x1xf32>
    %33 = vector.broadcast %32 : vector<8x1xf32> to vector<8x72xf32>
    %34 = arith.select %13, %31, %33 : vector<8x72xi1>, vector<8x72xf32>
    %35 = vector.shape_cast %27 : vector<8x1xf32> to vector<8x1xf32>
    %36 = vector.broadcast %35 : vector<8x1xf32> to vector<8x72xf32>
    %37 = arith.select %15, %36, %34 : vector<8x72xi1>, vector<8x72xf32>
    %38 = arith.extui %13 : vector<8x72xi1> to vector<8x72xi32>
    %39 = arith.extui %15 : vector<8x72xi1> to vector<8x72xi32>
    %40 = arith.addi %38, %39 : vector<8x72xi32>
    %c24_i32_3 = arith.constant 24 : i32
    %41 = vector.broadcast %c24_i32_3 : i32 to vector<8x72xi32>
    %42 = arith.muli %40, %41 : vector<8x72xi32>
    %43 = arith.addi %26, %42 : vector<8x72xi32>
    %44 = arith.cmpi eq, %11, %43 : vector<8x72xi32>
    %cst_4 = arith.constant 5.000000e+00 : f32
    %45 = vector.broadcast %cst_4 : f32 to vector<8x72xf32>
    %46 = arith.mulf %45, %0 : vector<8x72xf32>
    %cst_5 = arith.constant 5.000000e+00 : f32
    %47 = vector.broadcast %cst_5 : f32 to vector<8x72xf32>
    %48 = arith.mulf %47, %37 : vector<8x72xf32>
    %49 = arith.subf %46, %48 : vector<8x72xf32>
    %50 = math.absf %49 : vector<8x72xf32>
    %cst_6 = arith.constant 1.000000e+00 : f32
    %51 = vector.broadcast %cst_6 : f32 to vector<8x72xf32>
    %52 = arith.cmpf olt, %50, %51 : vector<8x72xf32>
    %cst_7 = arith.constant 5.000000e-01 : f32
    %53 = vector.broadcast %cst_7 : f32 to vector<8x72xf32>
    %54 = arith.mulf %53, %50 : vector<8x72xf32>
    %55 = arith.mulf %54, %50 : vector<8x72xf32>
    %cst_8 = arith.constant 5.000000e-01 : f32
    %56 = vector.broadcast %cst_8 : f32 to vector<8x72xf32>
    %57 = arith.subf %50, %56 : vector<8x72xf32>
    %58 = arith.select %52, %55, %57 : vector<8x72xi1>, vector<8x72xf32>
    %cst_9 = arith.constant 0.000000e+00 : f32
    %59 = vector.broadcast %cst_9 : f32 to vector<8x72xf32>
    %60 = arith.select %44, %58, %59 : vector<8x72xi1>, vector<8x72xf32>
    %61 = vector.shape_cast %60 : vector<8x72xf32> to vector<1x8x72xf32>
    %cst_10 = arith.constant dense<0.000000e+00> : vector<1xf32>
    %62 = vector.multi_reduction <add>, %61, %cst_10 [1, 2] : vector<1x8x72xf32> to vector<1xf32>
    %63 = vector.shape_cast %62 : vector<1xf32> to vector<1x1x1xf32>
    %64 = vector.extract %63[0, 0, 0] : f32 from vector<1x1x1xf32>
    %cst_11 = arith.constant 0.0416666679 : f32
    %65 = arith.mulf %64, %cst_11 : f32
    %c0_12 = arith.constant 0 : index
    %c0_13 = arith.constant 0 : index
    %66 = memref.load %arg2[%c0_12, %c0_13] : memref<1x1xf32, #tpu.memory_space<smem>>
    memref.store %65, %arg2[%c0_12, %c0_13] : memref<1x1xf32, #tpu.memory_space<smem>>
    return
  }
}

</mosaic_0001>

<bundles_post_ra>
// kernel: tpu_custom_call.1
= control target key start
LH: loop header
LB: loop body
LE: loop exit
PB: predicated region body
PF: predicated region fallthrough
CT: control target
= control target key end

     0   :  { %v137_v0 = vmov 2   ;;  %v138_v1 = vmov 1   ;;  %v139_v2 = vmov 15.0   ;;  %s166_s0 = inlined_call_operand.vmem [shape: f32[8,72], index: 0, kind: input, shape index: {}]   ;;  %s167_s1 = inlined_call_operand.vmem [shape: f32[8,3], index: 1, kind: input, shape index: {}]   ;;  %s168_s2 = inlined_call_operand.hbm [shape: f32[1,1], index: 2, kind: output, shape index: {}]  }
   0x1   :  { %116 = vset.pattern.permute.xlu1 %v137_v0  ;;  %114 = vset.pattern.permute.xlu0 %v138_v1  ;;  %121 = vrcp.f32 %v139_v2 }
   0x2   :  { %7 = vsyncpa [#allocation3], 0  ;;  %v140_v3 = vmov 0   ;;  %v13_v8 = vld [vmem:[%s167_s1] sm:$0xff]  ;;  %v29_v17 = vlaneseq  ;;  %vm75_vm6 = vcmask 588800   ;;  %s94_s13 = sshll.u32 %s168_s2, 4  ;;  %s95_s13 = int_to_ptr.hbm [resolvable:$true] %s94_s13 }
   0x3   :  { %118 = vset.pattern.permute.xlu2 %v140_v3  ;;  %v12_v22 = vld [vmem:[%s166_s0] sm:$0xff]  ;;  %s141_s16 = smov [#allocation2]  }
   0x4   :  { %v30_v20 = vand.u32 127, %v29_v17  ;;  %v65_v28 = vmul.f32 5.0, %v12_v22 }
   0x6   :  { %vm31_vm3 = vcmp.ge.s32.totalorder %v30_v20, 24  ;;  %vm32_vm4 = vcmp.ge.s32.totalorder %v30_v20, 48 }
   0x7   :  { %v122_v4 = vpop.eup %121  ;;  %v59_v23 = vsel %vm31_vm3, 1, %v140_v3  ;;  %v60_v24 = vsel %vm32_vm4, 1, %v140_v3 }
   0x8   :  { %v15_v5 = vmul.f32 15.0, %v122_v4  ;;  %vm19_vm0 = vweird.f32 %v122_v4  ;;  %v61_v29 = vadd.s32 %v60_v24, %v59_v23 }
   0xa   :  { %v16_v6 = vsub.f32 1.0, %v15_v5  ;;  %v62_v35 = vmul.u32 24, %v61_v29 }
   0xc   :  { %v17_v7 = vmul.f32 %v122_v4, %v16_v6 }
   0xe   :  { %v18_v9 = vadd.f32 %v122_v4, %v17_v7 }
  0x10   :  { %v20_v10 = vsel %vm19_vm0, %v122_v4, %v18_v9 }
  0x11   :  { %v21_v11 = vmul.f32 %v20_v10, %v13_v8 }
  0x13   :  { %v22_v12 = vfloor.f32 %v21_v11 }
  0x15   :  { %v23_v13 = vsub.f32 %v21_v11, %v22_v12  ;;  %v106_v14 = vcvt.f32.s32 %v22_v12 }
  0x17   :  { %55 = vperm.xlu1 %116, %v23_v13   ;;  %46 = vperm.xlu0 %114, %v23_v13   ;;  %vm25_vm1 = vcmp.gt.s32.totalorder %v106_v14, 0 }
  0x18   :  { %v26_v15 = vsel %vm25_vm1, %v106_v14, 0 }
  0x19   :  { %vm27_vm2 = vcmp.lt.s32.totalorder %v26_v15, 23 }
  0x1a   :  { %v28_v16 = vsel %vm27_vm2, %v26_v15, 23 }
  0x1b   :  { %37 = vperm.xlu2 %118, %v28_v16  }
  0x1f   :  { %117 = vset.pattern.permute.xlu1 %v138_v1  ;;  %115 = vset.pattern.permute.xlu0 %v140_v3 }
  0x20   :  { %34 = vperm.xlu1 %117, %v28_v16   ;;  %50 = vperm.xlu0 %115, %v23_v13  }
  0x23   :  { %119 = vset.pattern.permute.xlu2 %v137_v0 }
  0x24   :  { %41 = vperm.xlu2 %119, %v28_v16  }
  0x28   :  { %120 = vset.pattern.permute.xlu0 %v137_v0 }
  0x75   :  { %v38_v21 = vpop.permute.xlu2 %37 }
  0x7e   :  { %v42_v33 = vpop.permute.xlu2 %41 }
  0x89   :  { %v47_v18 = vpop.permute.xlu0 %46  ;;  %v56_v19 = vpop.permute.xlu1 %55 }
  0x92   :  { %v35_v25 = vpop.permute.xlu1 %34  ;;  %v51_v26 = vpop.permute.xlu0 %50 }
  0x93   :  { %v53_v27 = vsel %vm31_vm3, %v47_v18, %v51_v26  ;;  %v39_v31 = vsel %vm31_vm3, %v35_v25, %v38_v21 }
  0x94   :  { %v58_v30 = vsel %vm32_vm4, %v56_v19, %v53_v27  ;;  %v43_v36 = vsel %vm32_vm4, %v42_v33, %v39_v31 }
  0x95   :  { %v66_v32 = vmul.f32 5.0, %v58_v30  ;;  %v63_v38 = vadd.s32 %v62_v35, %v43_v36 }
  0x97   :  { %v67_v34 = vsub.f32 %v65_v28, %v66_v32  ;;  %vm64_vm7 = vcmp.eq.s32.totalorder %v30_v20, %v63_v38 }
  0x99   :  { %v68_v37 = vand.u32 2147483647, %v67_v34 }
  0x9b   :  { %v70_v39 = vmul.f32 0.5, %v68_v37  ;;  %v104_v41 = vadd.f32 -0.5, %v68_v37  ;;  %vm69_vm5 = vcmp.lt.f32.partialorder %v68_v37, 1.0 }
  0x9d   :  { %v71_v40 = vmul.f32 %v70_v39, %v68_v37 }
  0x9f   :  { %v73_v42 = vsel %vm69_vm5, %v71_v40, %v104_v41 }
  0xa0   :  { %v74_v43 = vsel %vm64_vm7, %v73_v42, 0.0 }
  0xa1   :  { %v76_v44 = vsel %vm75_vm6, %v74_v43, 0.0 }
  0xa2   :  { %77 = vadd.xlane.f32.xlu1 %v76_v44 }
 0x115   :  { %v78_v45 = vpop.xlane.xlu1 %77 }
 0x116   :  { %v79_v46 = vrot.slane %v78_v45, 4 }
 0x118   :  { %v80_v47 = vadd.f32 %v79_v46, %v78_v45 }
 0x11a   :  { %v81_v48 = vrot.slane %v80_v47, 2 }
 0x11c   :  { %v82_v49 = vadd.f32 %v81_v48, %v80_v47 }
 0x11e   :  { %v83_v50 = vrot.slane %v82_v49, 1 }
 0x120   :  { %v84_v51 = vadd.f32 %v83_v50, %v82_v49 }
 0x122   :  { %107 = vpush %v84_v51 }
 0x153   :  { %s108_s14 = spop %107 }
 0x154   :  { %s86_s15 = smul.f32 0.041666668, %s108_s14 }
 0x156   :  { %88 = sst [smem:[#allocation2]] %s86_s15 }
 0x157   :  { %97 = dma.smem_to_hbm %s141_s16, 16, %s95_s13, [#allocation3]  }
 0x158   :  { %135 = dma.done.wait [#allocation3], 16  }
 0x159   :  { %136 = vsyncadd [#allocation3], 4294967280 }
 0x15a   :  { %102 = sfence }
 0x15b   :  { %103 = vsyncpa [#allocation3], 1 }

</bundles_post_ra>
